<compile_context>
chip_gen: v5e
topology: v5e:2x2
jax: 0.10.0
libtpu: 0.0.40
codegen_flags: <defaults>
</compile_context>

<pallas_src>
import jax
import jax.numpy as jnp
from jax.experimental import pallas as pl
from jax.experimental.pallas import tpu as pltpu


def mlp_kernel(x_ref, w1_ref, b1_ref, w2_ref, b2_ref, w3_ref, b3_ref, o_ref):
    # In-kernel f32 -> bf16 cast of the streamed batch tile (VPU, hidden by DMA).
    x = x_ref[...].astype(w1_ref.dtype)                            # (TB, D) bf16
    # Layer 1: MXU matmul with f32 accumulation; bias + ReLU in f32 on the VPU.
    h1 = jnp.dot(x, w1_ref[...], preferred_element_type=jnp.float32) + b1_ref[...]
    h1 = jnp.maximum(h1, 0.0).astype(w2_ref.dtype)
    # Layer 2
    h2 = jnp.dot(h1, w2_ref[...], preferred_element_type=jnp.float32) + b2_ref[...]
    h2 = jnp.maximum(h2, 0.0).astype(w3_ref.dtype)
    # Layer 3: small (TB, C) f32 output, masked stores are fine (mem-bound kernel).
    out = jnp.dot(h2, w3_ref[...], preferred_element_type=jnp.float32) + b3_ref[...]
    o_ref[...] = out.astype(o_ref.dtype)


def action_classifier_forward(x, params, *, block_b=4096,
                              compute_dtype=jnp.bfloat16):
    """Fused forward pass. x: (B, input_size) f32 -> (B, num_classes) f32."""
    w1, b1, w2, b2, w3, b3 = params
    B, D = x.shape
    C = w3.shape[1]

    # bf16 MXU operand weights; biases stay f32 (added post f32 accumulation).
    w1c = w1.astype(compute_dtype)
    w2c = w2.astype(compute_dtype)
    w3c = w3.astype(compute_dtype)

    # ---- batch tiling ----
    pack = 16                                       # sublane pack (covers f32 & bf16)
    TB = max(pack, pl.cdiv(min(block_b, B), pack) * pack)
    # Guarantee >= 2 grid steps when the batch allows it (v7x: 2 TensorCores).
    if B >= 2 * pack:
        half = pl.cdiv(pl.cdiv(B, 2), pack) * pack
        TB = min(TB, half)
    Bp = pl.cdiv(B, TB) * TB
    xin = x if Bp == B else jnp.pad(x, ((0, Bp - B), (0, 0)))   # pad only ragged tail
    grid = (Bp // TB,)

    def resident(shape):                            # full-array block, never re-fetched
        return pl.BlockSpec(shape, lambda i: (0, 0))

    wbytes = ((D * 32 + 32 * 16 + 16 * C) * jnp.dtype(compute_dtype).itemsize
              + (32 + 16 + C) * 4)
    cost = pl.CostEstimate(
        flops=2 * Bp * (D * 32 + 32 * 16 + 16 * C),
        transcendentals=0,
        bytes_accessed=Bp * D * 4 + Bp * C * 4 + wbytes,
    )

    out = pl.pallas_call(
        mlp_kernel,
        out_shape=jax.ShapeDtypeStruct((Bp, C), jnp.float32),
        grid=grid,
        in_specs=[
            pl.BlockSpec((TB, D), lambda i: (i, 0)),   # x: streamed f32 batch tile
            resident(w1c.shape), resident(b1.shape),   # weights/biases VMEM-resident
            resident(w2c.shape), resident(b2.shape),
            resident(w3c.shape), resident(b3.shape),
        ],
        out_specs=pl.BlockSpec((TB, C), lambda i: (i, 0)),
        compiler_params=pltpu.CompilerParams(
            dimension_semantics=("parallel",)),
        cost_estimate=cost,
    )(xin, w1c, b1, w2c, b2, w3c, b3)

    return out[:B] if Bp != B else out


def init_params(key, input_size, num_classes):
    """Deterministic init mimicking PyTorch nn.Linear default:
    U(-1/sqrt(fan_in), 1/sqrt(fan_in)) for weight and bias.
    Weights stored (in, out) so y = x @ W + b (== x @ weight.T + bias)."""
    dims = [(input_size, 32), (32, 16), (16, num_classes)]
    params = []
    for fan_in, fan_out in dims:
        key, kw, kb = jax.random.split(key, 3)
        bound = 1.0 / jnp.sqrt(float(fan_in))
        w = jax.random.uniform(kw, (fan_in, fan_out), jnp.float32, -bound, bound)
        b = jax.random.uniform(kb, (1, fan_out), jnp.float32, -bound, bound)
        params += [w, b]
    return tuple(params)


def reference_forward(x, params, compute_dtype=jnp.bfloat16):
    """Pure-JAX reference mirroring the kernel's mixed-precision path.
    (bf16 MXU operands deviate from pure-f32 PyTorch numerics at ~1e-2 level,
    which is fine for argmax classification.)"""
    w1, b1, w2, b2, w3, b3 = params
    xd = x.astype(compute_dtype)
    h1 = jnp.maximum(
        jnp.dot(xd, w1.astype(compute_dtype),
                preferred_element_type=jnp.float32) + b1, 0.0).astype(compute_dtype)
    h2 = jnp.maximum(
        jnp.dot(h1, w2.astype(compute_dtype),
                preferred_element_type=jnp.float32) + b2, 0.0).astype(compute_dtype)
    return jnp.dot(h2, w3.astype(compute_dtype),
                   preferred_element_type=jnp.float32) + b3


if __name__ == "__main__":
    # Small synthetic shapes consistent with the module:
    # batch=8, input_size=32, num_classes=4 (len(encoder.classes_) is synthetic).
    B, INPUT_SIZE, NUM_CLASSES = 8, 32, 4

    key = jax.random.PRNGKey(0)
    key, kx = jax.random.split(key)
    x = jax.random.normal(kx, (B, INPUT_SIZE), jnp.float32)
    params = init_params(key, INPUT_SIZE, NUM_CLASSES)

    out = jax.block_until_ready(action_classifier_forward(x, params))
    ref = reference_forward(x, params)
    assert out.shape == (B, NUM_CLASSES)
    assert jnp.allclose(out, ref, atol=2e-2, rtol=2e-2), "mismatch vs reference (small batch)"

    # Exercise the multi-step batch grid (>=2 steps for v7x) + ragged-tail padding.
    B2 = 1000
    key, kx2 = jax.random.split(key)
    x2 = jax.random.normal(kx2, (B2, INPUT_SIZE), jnp.float32)
    out2 = jax.block_until_ready(action_classifier_forward(x2, params))
    ref2 = reference_forward(x2, params)
    assert out2.shape == (B2, NUM_CLASSES)
    assert jnp.allclose(out2, ref2, atol=2e-2, rtol=2e-2), "mismatch vs reference (tiled batch)"

    print("KERNEL_OK")
</pallas_src>

<mosaic_0001>
module attributes {stable_mosaic.version = 11 : i64} {
  func.func @mlp_kernel(%arg0: i32, %arg1: memref<16x32xf32, #tpu.memory_space<vmem>>, %arg2: memref<32x32xbf16, #tpu.memory_space<vmem>>, %arg3: memref<1x32xf32, #tpu.memory_space<vmem>>, %arg4: memref<32x16xbf16, #tpu.memory_space<vmem>>, %arg5: memref<1x16xf32, #tpu.memory_space<vmem>>, %arg6: memref<16x4xbf16, #tpu.memory_space<vmem>>, %arg7: memref<1x4xf32, #tpu.memory_space<vmem>>, %arg8: memref<16x4xf32, #tpu.memory_space<vmem>>) attributes {dimension_semantics = [#tpu.dimension_semantics<parallel>], iteration_bounds = array<i64: 1>, scalar_prefetch = 0 : i64, scratch_operands = 0 : i64, tpu.core_type = #tpu.core_type<tc>, window_params = [{transform_indices = @transform_0, window_bounds = array<i64: 16, 32>}, {pipeline_mode = #tpu.pipeline_mode<synchronous>, transform_indices = @transform_1, window_bounds = array<i64: 32, 32>}, {pipeline_mode = #tpu.pipeline_mode<synchronous>, transform_indices = @transform_2, window_bounds = array<i64: 1, 32>}, {pipeline_mode = #tpu.pipeline_mode<synchronous>, transform_indices = @transform_3, window_bounds = array<i64: 32, 16>}, {pipeline_mode = #tpu.pipeline_mode<synchronous>, transform_indices = @transform_4, window_bounds = array<i64: 1, 16>}, {pipeline_mode = #tpu.pipeline_mode<synchronous>, transform_indices = @transform_5, window_bounds = array<i64: 16, 4>}, {pipeline_mode = #tpu.pipeline_mode<synchronous>, transform_indices = @transform_6, window_bounds = array<i64: 1, 4>}, {transform_indices = @transform_7, window_bounds = array<i64: 16, 4>}]} {
    %c0 = arith.constant 0 : index
    %c0_0 = arith.constant 0 : index
    %0 = vector.load %arg1[%c0, %c0_0] : memref<16x32xf32, #tpu.memory_space<vmem>>, vector<16x32xf32>
    %1 = arith.truncf %0 : vector<16x32xf32> to vector<16x32xbf16>
    %c0_1 = arith.constant 0 : index
    %c0_2 = arith.constant 0 : index
    %2 = vector.load %arg2[%c0_1, %c0_2] : memref<32x32xbf16, #tpu.memory_space<vmem>>, vector<32x32xbf16>
    %cst = arith.constant dense<0.000000e+00> : vector<16x32xf32>
    %3 = tpu.matmul %1, %2, %cst {dimension_numbers = #tpu.dot_dimension_numbers<[1], [0], [0], [1], [0, 0, 1, 1], [], []>} : vector<16x32xbf16>, vector<32x32xbf16>, vector<16x32xf32> -> vector<16x32xf32>
    %c0_3 = arith.constant 0 : index
    %c0_4 = arith.constant 0 : index
    %4 = vector.load %arg3[%c0_3, %c0_4] : memref<1x32xf32, #tpu.memory_space<vmem>>, vector<1x32xf32>
    %5 = vector.broadcast %4 : vector<1x32xf32> to vector<16x32xf32>
    %6 = arith.addf %3, %5 : vector<16x32xf32>
    %cst_5 = arith.constant 0.000000e+00 : f32
    %7 = vector.broadcast %cst_5 : f32 to vector<16x32xf32>
    %8 = arith.maximumf %6, %7 : vector<16x32xf32>
    %9 = arith.truncf %8 : vector<16x32xf32> to vector<16x32xbf16>
    %c0_6 = arith.constant 0 : index
    %c0_7 = arith.constant 0 : index
    %10 = vector.load %arg4[%c0_6, %c0_7] : memref<32x16xbf16, #tpu.memory_space<vmem>>, vector<32x16xbf16>
    %cst_8 = arith.constant dense<0.000000e+00> : vector<16x16xf32>
    %11 = tpu.matmul %9, %10, %cst_8 {dimension_numbers = #tpu.dot_dimension_numbers<[1], [0], [0], [1], [0, 0, 1, 1], [], []>} : vector<16x32xbf16>, vector<32x16xbf16>, vector<16x16xf32> -> vector<16x16xf32>
    %c0_9 = arith.constant 0 : index
    %c0_10 = arith.constant 0 : index
    %12 = vector.load %arg5[%c0_9, %c0_10] : memref<1x16xf32, #tpu.memory_space<vmem>>, vector<1x16xf32>
    %13 = vector.broadcast %12 : vector<1x16xf32> to vector<16x16xf32>
    %14 = arith.addf %11, %13 : vector<16x16xf32>
    %cst_11 = arith.constant 0.000000e+00 : f32
    %15 = vector.broadcast %cst_11 : f32 to vector<16x16xf32>
    %16 = arith.maximumf %14, %15 : vector<16x16xf32>
    %17 = arith.truncf %16 : vector<16x16xf32> to vector<16x16xbf16>
    %c0_12 = arith.constant 0 : index
    %c0_13 = arith.constant 0 : index
    %18 = vector.load %arg6[%c0_12, %c0_13] : memref<16x4xbf16, #tpu.memory_space<vmem>>, vector<16x4xbf16>
    %cst_14 = arith.constant dense<0.000000e+00> : vector<16x4xf32>
    %19 = tpu.matmul %17, %18, %cst_14 {dimension_numbers = #tpu.dot_dimension_numbers<[1], [0], [0], [1], [0, 0, 1, 1], [], []>} : vector<16x16xbf16>, vector<16x4xbf16>, vector<16x4xf32> -> vector<16x4xf32>
    %c0_15 = arith.constant 0 : index
    %c0_16 = arith.constant 0 : index
    %20 = vector.load %arg7[%c0_15, %c0_16] : memref<1x4xf32, #tpu.memory_space<vmem>>, vector<1x4xf32>
    %21 = vector.broadcast %20 : vector<1x4xf32> to vector<16x4xf32>
    %22 = arith.addf %19, %21 : vector<16x4xf32>
    %c0_17 = arith.constant 0 : index
    %c0_18 = arith.constant 0 : index
    %23 = vector.load %arg8[%c0_17, %c0_18] : memref<16x4xf32, #tpu.memory_space<vmem>>, vector<16x4xf32>
    tpu.vector_store %arg8[%c0_17, %c0_18], %22 {strides = array<i32>} : memref<16x4xf32, #tpu.memory_space<vmem>>, vector<16x4xf32>,
    return
  }
  func.func @transform_0(%arg0: i32) -> (i32, i32) {
    %c0_i32 = arith.constant 0 : i32
    %c0_i32_0 = arith.constant 0 : i32
    return %arg0, %c0_i32 : i32, i32
  }
  func.func @transform_1(%arg0: i32) -> (i32, i32) {
    %c0_i32 = arith.constant 0 : i32
    %c0_i32_0 = arith.constant 0 : i32
    %c0_i32_1 = arith.constant 0 : i32
    return %c0_i32, %c0_i32_0 : i32, i32
  }
  func.func @transform_2(%arg0: i32) -> (i32, i32) {
    %c0_i32 = arith.constant 0 : i32
    %c0_i32_0 = arith.constant 0 : i32
    %c0_i32_1 = arith.constant 0 : i32
    return %c0_i32, %c0_i32_0 : i32, i32
  }
  func.func @transform_3(%arg0: i32) -> (i32, i32) {
    %c0_i32 = arith.constant 0 : i32
    %c0_i32_0 = arith.constant 0 : i32
    %c0_i32_1 = arith.constant 0 : i32
    return %c0_i32, %c0_i32_0 : i32, i32
  }
  func.func @transform_4(%arg0: i32) -> (i32, i32) {
    %c0_i32 = arith.constant 0 : i32
    %c0_i32_0 = arith.constant 0 : i32
    %c0_i32_1 = arith.constant 0 : i32
    return %c0_i32, %c0_i32_0 : i32, i32
  }
  func.func @transform_5(%arg0: i32) -> (i32, i32) {
    %c0_i32 = arith.constant 0 : i32
    %c0_i32_0 = arith.constant 0 : i32
    %c0_i32_1 = arith.constant 0 : i32
    return %c0_i32, %c0_i32_0 : i32, i32
  }
  func.func @transform_6(%arg0: i32) -> (i32, i32) {
    %c0_i32 = arith.constant 0 : i32
    %c0_i32_0 = arith.constant 0 : i32
    %c0_i32_1 = arith.constant 0 : i32
    return %c0_i32, %c0_i32_0 : i32, i32
  }
  func.func @transform_7(%arg0: i32) -> (i32, i32) {
    %c0_i32 = arith.constant 0 : i32
    %c0_i32_0 = arith.constant 0 : i32
    return %arg0, %c0_i32 : i32, i32
  }
}

</mosaic_0001>

<bundles_post_ra>
// kernel: tpu_custom_call.1
= control target key start
LH: loop header
LB: loop body
LE: loop exit
PB: predicated region body
PF: predicated region fallthrough
CT: control target
= control target key end

     0   :  { %vm50_vm0 = vcmask 261120   ;;  %vm123_vm1 = vcmask 130048   ;;  %vm141_vm2 = vcmask 31744   ;;  %s257_s1 = inlined_call_operand.vmem [shape: bf16[32,32], index: 1, kind: input, shape index: {}]   ;;  %s258_s0 = inlined_call_operand.vmem [shape: f32[16,32], index: 0, kind: input, shape index: {}]   ;;  %s259_s2 = inlined_call_operand.vmem [shape: f32[1,32], index: 2, kind: input, shape index: {}]   ;;  %s260_s4 = inlined_call_operand.vmem [shape: f32[1,16], index: 4, kind: input, shape index: {}]   ;;  %s261_s3 = inlined_call_operand.vmem [shape: bf16[32,16], index: 3, kind: input, shape index: {}]   ;;  %s262_s6 = inlined_call_operand.vmem [shape: f32[1,4], index: 6, kind: input, shape index: {}]   ;;  %s263_s5 = inlined_call_operand.vmem [shape: bf16[16,4], index: 5, kind: input, shape index: {}]   ;;  %s264_s7 = inlined_call_operand.vmem [shape: f32[16,4], index: 7, kind: output, shape index: {}]  }
   0x1   :  { %v172_v0 = vld [vmem:[%s257_s1 + $0x8] sm:$0xff]  ;;  %v171_v1 = vld [vmem:[%s257_s1] sm:$0xff] }
   0x2   :  { %60 = vmatpush.bf16.msra.mxu0 %v172_v0  ;;  %v27_v2 = vld [vmem:[%s258_s0] sm:$0xff]  ;;  %v28_v3 = vld [vmem:[%s258_s0 + $0x8] sm:$0xff] }
   0x3   :  { %v29_v4 = vpack.c.bf16 %v28_v3, %v27_v2  ;;  %v174_v5 = vld [vmem:[%s261_s3 + $0x8] sm:$0xff]  ;;  %v173_v6 = vld [vmem:[%s261_s3] sm:$0xff] }
   0x4   :  { %100 = vmatpush.bf16.msra.mxu1 %v174_v5  ;;  %v176_v8 = vld [vmem:[%s259_s2] ss:$0 sm:$0xff] }
   0x5   :  { %v175_v15 = vld [vmem:[%s263_s5] sm:$0xff] }
   0x6   :  { %61 = vmatpush.bf16.msra.mxu0 %v171_v1  ;;  %134 = vmatpush.bf16.msra.mxu2 %v175_v15  ;;  %v177_v17 = vld [vmem:[%s260_s4] ss:$0 sm:$0xff] }
   0x7   :  { %v178_v24 = vld [vmem:[%s262_s6] ss:$0 sm:$0xff] }
   0x8   :  { %101 = vmatpush.bf16.msra.mxu1 %v173_v6 }
   0x9   :  { %156 = vmatmul.msk.bf16.vlgmr.msra.gmra.mxu0 %vm50_vm0, %v29_v4 }
  0x86   :  { %v63_v7 = vpop.f32.mrf.mxu0 }
  0x87   :  { %v64_v9 = vadd.f32 %v176_v8, %v63_v7 }
  0x89   :  { %v68_v12 = vmax.f32 %v64_v9, 0.0 }
  0x8e   :  { %v65_v10 = vpop.f32.mrf.mxu0 }
  0x8f   :  { %v66_v11 = vadd.f32 %v176_v8, %v65_v10 }
  0x91   :  { %v69_v13 = vmax.f32 %v66_v11, 0.0 }
  0x93   :  { %v70_v14 = vpack.c.bf16 %v69_v13, %v68_v12 }
  0x95   :  { %165 = vmatmul.msk.bf16.vlgmr.msra.gmra.mxu1 %vm50_vm0, %v70_v14 }
 0x112   :  { %v103_v16 = vpop.f32.mrf.mxu1 }
 0x113   :  { %v104_v18 = vadd.f32 %v177_v17, %v103_v16 }
 0x115   :  { %v108_v21 = vmax.f32 %v104_v18, 0.0 }
 0x11a   :  { %v105_v19 = vpop.f32.mrf.mxu1 }
 0x11b   :  { %v106_v20 = vadd.f32 %v177_v17, %v105_v19 }
 0x11d   :  { %v109_v22 = vmax.f32 %v106_v20, 0.0 }
 0x11f   :  { %v110_v23 = vpack.c.bf16 %v109_v22, %v108_v21 }
 0x121   :  { %170 = vmatmul.msk.bf16.vlgmr.msra.gmra.mxu2 %vm123_vm1, %v110_v23 }
 0x1a4   :  { %v136_v25 = vpop.f32.mrf.mxu2 }
 0x1a5   :  { %v137_v26 = vadd.f32 %v178_v24, %v136_v25 }
 0x1a7   :  { %142 = vst.msk [vmem:[%s264_s7] sm:$0xff] %vm141_vm2, %v137_v26 }
 0x1ac   :  { %v138_v27 = vpop.f32.mrf.mxu2 }
 0x1ad   :  { %v139_v28 = vadd.f32 %v178_v24, %v138_v27 }
 0x1af   :  { %143 = vst.msk [vmem:[%s264_s7 + $0x8] sm:$0xff] %vm141_vm2, %v139_v28 }

</bundles_post_ra>
